<compile_context>
chip_gen: v6e
topology: v6e:2x2x1
jax: 0.10.0
libtpu: 0.0.40
codegen_flags: <defaults>
</compile_context>

<pallas_src>
import functools

import jax
import jax.numpy as jnp
from jax.experimental import pallas as pl
from jax.experimental.pallas import tpu as pltpu

LN_EPS = 1e-5
LANE = 128
SUBLANE = 8


def _round_up(x, m):
    return ((x + m - 1) // m) * m


def _layernorm(x, gamma, beta, d_actual, d_padded):
    """LayerNorm over the last axis; statistics over the first d_actual lanes only."""
    if d_actual != d_padded:
        lane = jax.lax.broadcasted_iota(jnp.int32, x.shape, dimension=1)
        mask = lane < d_actual
        x = jnp.where(mask, x, 0.0)
    denom = jnp.float32(d_actual)
    mu = jnp.sum(x, axis=-1, keepdims=True) / denom
    xc = x - mu
    if d_actual != d_padded:
        xc = jnp.where(mask, xc, 0.0)
    var = jnp.sum(xc * xc, axis=-1, keepdims=True) / denom
    inv = jax.lax.rsqrt(var + LN_EPS)
    # gamma/beta are zero-padded, so padded lanes stay exactly zero.
    return xc * inv * gamma + beta


def _main_branch(x, g1, be1, w1, b1, g2, be2, w2, b2, din, dout, din_p, dout_p):
    h = _layernorm(x, g1, be1, din, din_p)
    # Dropout(p) -> identity in eval mode.
    h = jnp.dot(h, w1, preferred_element_type=jnp.float32) + b1
    h = jnp.maximum(h, 0.0)  # ReLU
    h = _layernorm(h, g2, be2, dout, dout_p)
    # Dropout(p) -> identity in eval mode.
    h = jnp.dot(h, w2, preferred_element_type=jnp.float32) + b2
    return h


def _resblock_kernel_proj(x_ref, wres_ref, bres_ref, g1_ref, be1_ref,
                          w1_ref, b1_ref, g2_ref, be2_ref, w2_ref, b2_ref,
                          o_ref, *, din, dout):
    din_p = x_ref.shape[-1]
    dout_p = o_ref.shape[-1]
    x = x_ref[...].astype(jnp.float32)
    residual = (jnp.dot(x, wres_ref[...], preferred_element_type=jnp.float32)
                + bres_ref[...])
    h = _main_branch(x, g1_ref[...], be1_ref[...], w1_ref[...], b1_ref[...],
                     g2_ref[...], be2_ref[...], w2_ref[...], b2_ref[...],
                     din, dout, din_p, dout_p)
    o_ref[...] = jnp.maximum(h + residual, 0.0).astype(o_ref.dtype)


def _resblock_kernel_id(x_ref, g1_ref, be1_ref, w1_ref, b1_ref,
                        g2_ref, be2_ref, w2_ref, b2_ref,
                        o_ref, *, din, dout):
    # in_dim == out_dim: residual branch is nn.Identity -> no matmul, no w_res.
    din_p = x_ref.shape[-1]
    dout_p = o_ref.shape[-1]
    x = x_ref[...].astype(jnp.float32)
    h = _main_branch(x, g1_ref[...], be1_ref[...], w1_ref[...], b1_ref[...],
                     g2_ref[...], be2_ref[...], w2_ref[...], b2_ref[...],
                     din, dout, din_p, dout_p)
    o_ref[...] = jnp.maximum(h + x, 0.0).astype(o_ref.dtype)


@jax.jit
def resblock_forward(x, params):
    """x: (..., in_dim) -> (..., out_dim).  Eval-mode dropout (identity)."""
    in_dim = x.shape[-1]
    out_dim = params["w1"].shape[1]
    lead = x.shape[:-1]
    x2 = x.reshape(-1, in_dim)
    n = x2.shape[0]
    has_proj = "w_res" in params

    din_p = _round_up(in_dim, LANE)
    dout_p = _round_up(out_dim, LANE)

    # Row tile: big enough to amortize per-grid-step overhead (~0.35 us/step),
    # small enough to double-buffer comfortably; clipped for tiny inputs.
    tm = min(512, _round_up(n, SUBLANE))
    n_pad = _round_up(n, tm)
    grid = (n_pad // tm,)

    def pad2(a, r, c):
        a = a.astype(jnp.float32)
        return jnp.pad(a, ((0, r - a.shape[0]), (0, c - a.shape[1])))

    xp = pad2(x2, n_pad, din_p)
    g1 = pad2(params["ln1_g"], 1, din_p)
    be1 = pad2(params["ln1_b"], 1, din_p)
    w1 = pad2(params["w1"], din_p, dout_p)
    b1 = pad2(params["b1"], 1, dout_p)
    g2 = pad2(params["ln2_g"], 1, dout_p)
    be2 = pad2(params["ln2_b"], 1, dout_p)
    w2 = pad2(params["w2"], dout_p, dout_p)
    b2 = pad2(params["b2"], 1, dout_p)

    row_in = pl.BlockSpec((tm, din_p), lambda i: (i, 0))
    row_out = pl.BlockSpec((tm, dout_p), lambda i: (i, 0))

    def resident(shape):
        # Same block for every grid step -> stays in VMEM, DMA'd once.
        return pl.BlockSpec(shape, lambda i: (0, 0))

    flops = 2 * n_pad * din_p * dout_p + 2 * n_pad * dout_p * dout_p
    bytes_accessed = (xp.size + w1.size + w2.size + n_pad * dout_p) * 4

    if has_proj:
        wres = pad2(params["w_res"], din_p, dout_p)
        bres = pad2(params["b_res"], 1, dout_p)
        flops += 2 * n_pad * din_p * dout_p
        bytes_accessed += wres.size * 4
        operands = (xp, wres, bres, g1, be1, w1, b1, g2, be2, w2, b2)
        in_specs = [row_in,
                    resident((din_p, dout_p)), resident((1, dout_p)),
                    resident((1, din_p)), resident((1, din_p)),
                    resident((din_p, dout_p)), resident((1, dout_p)),
                    resident((1, dout_p)), resident((1, dout_p)),
                    resident((dout_p, dout_p)), resident((1, dout_p))]
        kernel = functools.partial(_resblock_kernel_proj, din=in_dim, dout=out_dim)
        weight_bytes = (2 * din_p * dout_p + dout_p * dout_p) * 4
    else:
        operands = (xp, g1, be1, w1, b1, g2, be2, w2, b2)
        in_specs = [row_in,
                    resident((1, din_p)), resident((1, din_p)),
                    resident((din_p, dout_p)), resident((1, dout_p)),
                    resident((1, dout_p)), resident((1, dout_p)),
                    resident((dout_p, dout_p)), resident((1, dout_p))]
        kernel = functools.partial(_resblock_kernel_id, din=in_dim, dout=out_dim)
        weight_bytes = (din_p * dout_p + dout_p * dout_p) * 4

    # VMEM budget: resident weights + double-buffered x/out tiles + intermediates.
    est = (weight_bytes
           + 2 * 2 * tm * (din_p + dout_p) * 4       # double-buffered x / out tiles
           + tm * (din_p + 3 * dout_p) * 4           # live intermediates (rough)
           + (2 * din_p + 5 * dout_p) * 4)           # gammas/betas/biases
    # Cap at 64 MiB so the same kernel fits v7x VMEM; floor at 32 MiB for pipelining.
    vmem_limit = int(min(64 * 1024 * 1024, max(32 * 1024 * 1024, 2 * est)))

    out_padded = pl.pallas_call(
        kernel,
        out_shape=jax.ShapeDtypeStruct((n_pad, dout_p), jnp.float32),
        grid=grid,
        in_specs=in_specs,
        out_specs=row_out,
        compiler_params=pltpu.CompilerParams(
            dimension_semantics=("parallel",),
            vmem_limit_bytes=vmem_limit),
        cost_estimate=pl.CostEstimate(
            flops=int(flops),
            transcendentals=int(2 * n_pad),
            bytes_accessed=int(bytes_accessed)),
    )(*operands)

    out = out_padded[:n, :out_dim].astype(x.dtype)
    return out.reshape(*lead, out_dim)


def init_params(key, in_dim, out_dim):
    """Synthetic parameters matching nn.Linear / nn.LayerNorm shapes.

    PyTorch Linear stores W as (out, in); we store the transpose (in, out) so
    the kernel does x @ W directly. When in_dim == out_dim the residual branch
    is nn.Identity, so no w_res/b_res are created (and no residual matmul runs).
    """
    ks = jax.random.split(key, 6)
    scale_in = 1.0 / jnp.sqrt(in_dim)
    scale_out = 1.0 / jnp.sqrt(out_dim)

    params = {
        "ln1_g": jnp.ones((1, in_dim), jnp.float32),
        "ln1_b": jnp.zeros((1, in_dim), jnp.float32),
        "w1": jax.random.uniform(ks[2], (in_dim, out_dim), jnp.float32,
                                 -scale_in, scale_in),
        "b1": jax.random.uniform(ks[3], (1, out_dim), jnp.float32,
                                 -scale_in, scale_in),
        "ln2_g": jnp.ones((1, out_dim), jnp.float32),
        "ln2_b": jnp.zeros((1, out_dim), jnp.float32),
        "w2": jax.random.uniform(ks[4], (out_dim, out_dim), jnp.float32,
                                 -scale_out, scale_out),
        "b2": jax.random.uniform(ks[5], (1, out_dim), jnp.float32,
                                 -scale_out, scale_out),
    }
    if in_dim != out_dim:
        params["w_res"] = jax.random.uniform(ks[0], (in_dim, out_dim), jnp.float32,
                                             -scale_in, scale_in)
        params["b_res"] = jax.random.uniform(ks[1], (1, out_dim), jnp.float32,
                                             -scale_in, scale_in)
    return params


def resblock_reference(x, params):
    """Pure-JAX reference (eval-mode dropout) for correctness checking."""
    def ln(v, g, b):
        mu = jnp.mean(v, -1, keepdims=True)
        var = jnp.mean((v - mu) ** 2, -1, keepdims=True)
        return (v - mu) / jnp.sqrt(var + LN_EPS) * g + b

    residual = x @ params["w_res"] + params["b_res"] if "w_res" in params else x
    h = ln(x, params["ln1_g"], params["ln1_b"])
    h = jnp.maximum(h @ params["w1"] + params["b1"], 0.0)
    h = ln(h, params["ln2_g"], params["ln2_b"])
    h = h @ params["w2"] + params["b2"]
    return jnp.maximum(h + residual, 0.0)


if __name__ == "__main__":
    key = jax.random.PRNGKey(0)
    k_x1, k_p1, k_x2, k_p2 = jax.random.split(key, 4)

    batch, seq = 2, 4

    # Case 1: in_dim != out_dim -> Linear residual projection inside the kernel.
    in_dim, out_dim = 32, 64
    x1 = jax.random.normal(k_x1, (batch, seq, in_dim), jnp.float32)
    p1 = init_params(k_p1, in_dim, out_dim)
    out1 = jax.block_until_ready(resblock_forward(x1, p1))
    ref1 = resblock_reference(x1, p1)
    assert out1.shape == (batch, seq, out_dim)
    assert jnp.allclose(out1, ref1, atol=1e-4, rtol=1e-4), "mismatch (projection case)"

    # Case 2: in_dim == out_dim -> identity residual, no residual matmul.
    dim = 64
    x2 = jax.random.normal(k_x2, (batch, seq, dim), jnp.float32)
    p2 = init_params(k_p2, dim, dim)
    out2 = jax.block_until_ready(resblock_forward(x2, p2))
    ref2 = resblock_reference(x2, p2)
    assert out2.shape == (batch, seq, dim)
    assert jnp.allclose(out2, ref2, atol=1e-4, rtol=1e-4), "mismatch (identity case)"

    print("KERNEL_OK")
</pallas_src>

<mosaic_0001>
module attributes {stable_mosaic.version = 11 : i64} {
  func.func @_resblock_kernel_proj(%arg0: i32, %arg1: memref<8x128xf32, #tpu.memory_space<vmem>>, %arg2: memref<128x128xf32, #tpu.memory_space<vmem>>, %arg3: memref<1x128xf32, #tpu.memory_space<vmem>>, %arg4: memref<1x128xf32, #tpu.memory_space<vmem>>, %arg5: memref<1x128xf32, #tpu.memory_space<vmem>>, %arg6: memref<128x128xf32, #tpu.memory_space<vmem>>, %arg7: memref<1x128xf32, #tpu.memory_space<vmem>>, %arg8: memref<1x128xf32, #tpu.memory_space<vmem>>, %arg9: memref<1x128xf32, #tpu.memory_space<vmem>>, %arg10: memref<128x128xf32, #tpu.memory_space<vmem>>, %arg11: memref<1x128xf32, #tpu.memory_space<vmem>>, %arg12: memref<8x128xf32, #tpu.memory_space<vmem>>) attributes {dimension_semantics = [#tpu.dimension_semantics<parallel>], iteration_bounds = array<i64: 1>, scalar_prefetch = 0 : i64, scratch_operands = 0 : i64, tpu.core_type = #tpu.core_type<tc>, window_params = [{transform_indices = @transform_0, window_bounds = array<i64: 8, 128>}, {pipeline_mode = #tpu.pipeline_mode<synchronous>, transform_indices = @transform_1, window_bounds = array<i64: 128, 128>}, {pipeline_mode = #tpu.pipeline_mode<synchronous>, transform_indices = @transform_2, window_bounds = array<i64: 1, 128>}, {pipeline_mode = #tpu.pipeline_mode<synchronous>, transform_indices = @transform_3, window_bounds = array<i64: 1, 128>}, {pipeline_mode = #tpu.pipeline_mode<synchronous>, transform_indices = @transform_4, window_bounds = array<i64: 1, 128>}, {pipeline_mode = #tpu.pipeline_mode<synchronous>, transform_indices = @transform_5, window_bounds = array<i64: 128, 128>}, {pipeline_mode = #tpu.pipeline_mode<synchronous>, transform_indices = @transform_6, window_bounds = array<i64: 1, 128>}, {pipeline_mode = #tpu.pipeline_mode<synchronous>, transform_indices = @transform_7, window_bounds = array<i64: 1, 128>}, {pipeline_mode = #tpu.pipeline_mode<synchronous>, transform_indices = @transform_8, window_bounds = array<i64: 1, 128>}, {pipeline_mode = #tpu.pipeline_mode<synchronous>, transform_indices = @transform_9, window_bounds = array<i64: 128, 128>}, {pipeline_mode = #tpu.pipeline_mode<synchronous>, transform_indices = @transform_10, window_bounds = array<i64: 1, 128>}, {transform_indices = @transform_11, window_bounds = array<i64: 8, 128>}]} {
    %c0 = arith.constant 0 : index
    %c0_0 = arith.constant 0 : index
    %0 = vector.load %arg1[%c0, %c0_0] : memref<8x128xf32, #tpu.memory_space<vmem>>, vector<8x128xf32>
    %c0_1 = arith.constant 0 : index
    %c0_2 = arith.constant 0 : index
    %1 = vector.load %arg2[%c0_1, %c0_2] : memref<128x128xf32, #tpu.memory_space<vmem>>, vector<128x128xf32>
    %cst = arith.constant dense<0.000000e+00> : vector<8x128xf32>
    %2 = tpu.matmul %0, %1, %cst {dimension_numbers = #tpu.dot_dimension_numbers<[1], [0], [0], [1], [0, 0, 1, 1], [], []>} : vector<8x128xf32>, vector<128x128xf32>, vector<8x128xf32> -> vector<8x128xf32>
    %c0_3 = arith.constant 0 : index
    %c0_4 = arith.constant 0 : index
    %3 = vector.load %arg3[%c0_3, %c0_4] : memref<1x128xf32, #tpu.memory_space<vmem>>, vector<1x128xf32>
    %4 = vector.broadcast %3 : vector<1x128xf32> to vector<8x128xf32>
    %5 = arith.addf %2, %4 : vector<8x128xf32>
    %c0_5 = arith.constant 0 : index
    %c0_6 = arith.constant 0 : index
    %6 = vector.load %arg4[%c0_5, %c0_6] : memref<1x128xf32, #tpu.memory_space<vmem>>, vector<1x128xf32>
    %c0_7 = arith.constant 0 : index
    %c0_8 = arith.constant 0 : index
    %7 = vector.load %arg5[%c0_7, %c0_8] : memref<1x128xf32, #tpu.memory_space<vmem>>, vector<1x128xf32>
    %c0_9 = arith.constant 0 : index
    %c0_10 = arith.constant 0 : index
    %8 = vector.load %arg6[%c0_9, %c0_10] : memref<128x128xf32, #tpu.memory_space<vmem>>, vector<128x128xf32>
    %c0_11 = arith.constant 0 : index
    %c0_12 = arith.constant 0 : index
    %9 = vector.load %arg7[%c0_11, %c0_12] : memref<1x128xf32, #tpu.memory_space<vmem>>, vector<1x128xf32>
    %c0_13 = arith.constant 0 : index
    %c0_14 = arith.constant 0 : index
    %10 = vector.load %arg8[%c0_13, %c0_14] : memref<1x128xf32, #tpu.memory_space<vmem>>, vector<1x128xf32>
    %c0_15 = arith.constant 0 : index
    %c0_16 = arith.constant 0 : index
    %11 = vector.load %arg9[%c0_15, %c0_16] : memref<1x128xf32, #tpu.memory_space<vmem>>, vector<1x128xf32>
    %c0_17 = arith.constant 0 : index
    %c0_18 = arith.constant 0 : index
    %12 = vector.load %arg10[%c0_17, %c0_18] : memref<128x128xf32, #tpu.memory_space<vmem>>, vector<128x128xf32>
    %c0_19 = arith.constant 0 : index
    %c0_20 = arith.constant 0 : index
    %13 = vector.load %arg11[%c0_19, %c0_20] : memref<1x128xf32, #tpu.memory_space<vmem>>, vector<1x128xf32>
    %14 = tpu.iota {dimensions = array<i32: 1>} : vector<8x128xi32>
    %c32_i32 = arith.constant 32 : i32
    %15 = vector.broadcast %c32_i32 : i32 to vector<8x128xi32>
    %16 = arith.cmpi slt, %14, %15 : vector<8x128xi32>
    %cst_21 = arith.constant 0.000000e+00 : f32
    %17 = vector.broadcast %cst_21 : f32 to vector<8x128xf32>
    %18 = arith.select %16, %0, %17 : vector<8x128xi1>, vector<8x128xf32>
    %cst_22 = arith.constant dense<0.000000e+00> : vector<8xf32>
    %19 = vector.multi_reduction <add>, %18, %cst_22 [1] : vector<8x128xf32> to vector<8xf32>
    %20 = vector.shape_cast %19 : vector<8xf32> to vector<8x1xf32>
    %cst_23 = arith.constant 3.200000e+01 : f32
    %21 = vector.broadcast %cst_23 : f32 to vector<8x1xf32>
    %22 = arith.divf %20, %21 : vector<8x1xf32>
    %23 = vector.broadcast %22 : vector<8x1xf32> to vector<8x128xf32>
    %24 = arith.subf %18, %23 : vector<8x128xf32>
    %cst_24 = arith.constant 0.000000e+00 : f32
    %25 = vector.broadcast %cst_24 : f32 to vector<8x128xf32>
    %26 = arith.select %16, %24, %25 : vector<8x128xi1>, vector<8x128xf32>
    %27 = arith.mulf %26, %26 : vector<8x128xf32>
    %cst_25 = arith.constant dense<0.000000e+00> : vector<8xf32>
    %28 = vector.multi_reduction <add>, %27, %cst_25 [1] : vector<8x128xf32> to vector<8xf32>
    %29 = vector.shape_cast %28 : vector<8xf32> to vector<8x1xf32>
    %cst_26 = arith.constant 3.200000e+01 : f32
    %30 = vector.broadcast %cst_26 : f32 to vector<8x1xf32>
    %31 = arith.divf %29, %30 : vector<8x1xf32>
    %cst_27 = arith.constant 9.99999974E-6 : f32
    %32 = vector.broadcast %cst_27 : f32 to vector<8x1xf32>
    %33 = arith.addf %31, %32 : vector<8x1xf32>
    %34 = math.rsqrt %33 : vector<8x1xf32>
    %35 = vector.broadcast %34 : vector<8x1xf32> to vector<8x128xf32>
    %36 = arith.mulf %26, %35 : vector<8x128xf32>
    %37 = vector.broadcast %6 : vector<1x128xf32> to vector<8x128xf32>
    %38 = arith.mulf %36, %37 : vector<8x128xf32>
    %39 = vector.broadcast %7 : vector<1x128xf32> to vector<8x128xf32>
    %40 = arith.addf %38, %39 : vector<8x128xf32>
    %cst_28 = arith.constant dense<0.000000e+00> : vector<8x128xf32>
    %41 = tpu.matmul %40, %8, %cst_28 {dimension_numbers = #tpu.dot_dimension_numbers<[1], [0], [0], [1], [0, 0, 1, 1], [], []>} : vector<8x128xf32>, vector<128x128xf32>, vector<8x128xf32> -> vector<8x128xf32>
    %42 = vector.broadcast %9 : vector<1x128xf32> to vector<8x128xf32>
    %43 = arith.addf %41, %42 : vector<8x128xf32>
    %cst_29 = arith.constant 0.000000e+00 : f32
    %44 = vector.broadcast %cst_29 : f32 to vector<8x128xf32>
    %45 = arith.maximumf %43, %44 : vector<8x128xf32>
    %46 = tpu.iota {dimensions = array<i32: 1>} : vector<8x128xi32>
    %c64_i32 = arith.constant 64 : i32
    %47 = vector.broadcast %c64_i32 : i32 to vector<8x128xi32>
    %48 = arith.cmpi slt, %46, %47 : vector<8x128xi32>
    %cst_30 = arith.constant 0.000000e+00 : f32
    %49 = vector.broadcast %cst_30 : f32 to vector<8x128xf32>
    %50 = arith.select %48, %45, %49 : vector<8x128xi1>, vector<8x128xf32>
    %cst_31 = arith.constant dense<0.000000e+00> : vector<8xf32>
    %51 = vector.multi_reduction <add>, %50, %cst_31 [1] : vector<8x128xf32> to vector<8xf32>
    %52 = vector.shape_cast %51 : vector<8xf32> to vector<8x1xf32>
    %cst_32 = arith.constant 6.400000e+01 : f32
    %53 = vector.broadcast %cst_32 : f32 to vector<8x1xf32>
    %54 = arith.divf %52, %53 : vector<8x1xf32>
    %55 = vector.broadcast %54 : vector<8x1xf32> to vector<8x128xf32>
    %56 = arith.subf %50, %55 : vector<8x128xf32>
    %cst_33 = arith.constant 0.000000e+00 : f32
    %57 = vector.broadcast %cst_33 : f32 to vector<8x128xf32>
    %58 = arith.select %48, %56, %57 : vector<8x128xi1>, vector<8x128xf32>
    %59 = arith.mulf %58, %58 : vector<8x128xf32>
    %cst_34 = arith.constant dense<0.000000e+00> : vector<8xf32>
    %60 = vector.multi_reduction <add>, %59, %cst_34 [1] : vector<8x128xf32> to vector<8xf32>
    %61 = vector.shape_cast %60 : vector<8xf32> to vector<8x1xf32>
    %cst_35 = arith.constant 6.400000e+01 : f32
    %62 = vector.broadcast %cst_35 : f32 to vector<8x1xf32>
    %63 = arith.divf %61, %62 : vector<8x1xf32>
    %cst_36 = arith.constant 9.99999974E-6 : f32
    %64 = vector.broadcast %cst_36 : f32 to vector<8x1xf32>
    %65 = arith.addf %63, %64 : vector<8x1xf32>
    %66 = math.rsqrt %65 : vector<8x1xf32>
    %67 = vector.broadcast %66 : vector<8x1xf32> to vector<8x128xf32>
    %68 = arith.mulf %58, %67 : vector<8x128xf32>
    %69 = vector.broadcast %10 : vector<1x128xf32> to vector<8x128xf32>
    %70 = arith.mulf %68, %69 : vector<8x128xf32>
    %71 = vector.broadcast %11 : vector<1x128xf32> to vector<8x128xf32>
    %72 = arith.addf %70, %71 : vector<8x128xf32>
    %cst_37 = arith.constant dense<0.000000e+00> : vector<8x128xf32>
    %73 = tpu.matmul %72, %12, %cst_37 {dimension_numbers = #tpu.dot_dimension_numbers<[1], [0], [0], [1], [0, 0, 1, 1], [], []>} : vector<8x128xf32>, vector<128x128xf32>, vector<8x128xf32> -> vector<8x128xf32>
    %74 = vector.broadcast %13 : vector<1x128xf32> to vector<8x128xf32>
    %75 = arith.addf %73, %74 : vector<8x128xf32>
    %76 = arith.addf %75, %5 : vector<8x128xf32>
    %cst_38 = arith.constant 0.000000e+00 : f32
    %77 = vector.broadcast %cst_38 : f32 to vector<8x128xf32>
    %78 = arith.maximumf %76, %77 : vector<8x128xf32>
    %c0_39 = arith.constant 0 : index
    %c0_40 = arith.constant 0 : index
    %79 = vector.load %arg12[%c0_39, %c0_40] : memref<8x128xf32, #tpu.memory_space<vmem>>, vector<8x128xf32>
    tpu.vector_store %arg12[%c0_39, %c0_40], %78 {strides = array<i32>} : memref<8x128xf32, #tpu.memory_space<vmem>>, vector<8x128xf32>,
    return
  }
  func.func @transform_0(%arg0: i32) -> (i32, i32) {
    %c0_i32 = arith.constant 0 : i32
    %c0_i32_0 = arith.constant 0 : i32
    return %arg0, %c0_i32 : i32, i32
  }
  func.func @transform_1(%arg0: i32) -> (i32, i32) {
    %c0_i32 = arith.constant 0 : i32
    %c0_i32_0 = arith.constant 0 : i32
    %c0_i32_1 = arith.constant 0 : i32
    return %c0_i32, %c0_i32_0 : i32, i32
  }
  func.func @transform_2(%arg0: i32) -> (i32, i32) {
    %c0_i32 = arith.constant 0 : i32
    %c0_i32_0 = arith.constant 0 : i32
    %c0_i32_1 = arith.constant 0 : i32
    return %c0_i32, %c0_i32_0 : i32, i32
  }
  func.func @transform_3(%arg0: i32) -> (i32, i32) {
    %c0_i32 = arith.constant 0 : i32
    %c0_i32_0 = arith.constant 0 : i32
    %c0_i32_1 = arith.constant 0 : i32
    return %c0_i32, %c0_i32_0 : i32, i32
  }
  func.func @transform_4(%arg0: i32) -> (i32, i32) {
    %c0_i32 = arith.constant 0 : i32
    %c0_i32_0 = arith.constant 0 : i32
    %c0_i32_1 = arith.constant 0 : i32
    return %c0_i32, %c0_i32_0 : i32, i32
  }
  func.func @transform_5(%arg0: i32) -> (i32, i32) {
    %c0_i32 = arith.constant 0 : i32
    %c0_i32_0 = arith.constant 0 : i32
    %c0_i32_1 = arith.constant 0 : i32
    return %c0_i32, %c0_i32_0 : i32, i32
  }
  func.func @transform_6(%arg0: i32) -> (i32, i32) {
    %c0_i32 = arith.constant 0 : i32
    %c0_i32_0 = arith.constant 0 : i32
    %c0_i32_1 = arith.constant 0 : i32
    return %c0_i32, %c0_i32_0 : i32, i32
  }
  func.func @transform_7(%arg0: i32) -> (i32, i32) {
    %c0_i32 = arith.constant 0 : i32
    %c0_i32_0 = arith.constant 0 : i32
    %c0_i32_1 = arith.constant 0 : i32
    return %c0_i32, %c0_i32_0 : i32, i32
  }
  func.func @transform_8(%arg0: i32) -> (i32, i32) {
    %c0_i32 = arith.constant 0 : i32
    %c0_i32_0 = arith.constant 0 : i32
    %c0_i32_1 = arith.constant 0 : i32
    return %c0_i32, %c0_i32_0 : i32, i32
  }
  func.func @transform_9(%arg0: i32) -> (i32, i32) {
    %c0_i32 = arith.constant 0 : i32
    %c0_i32_0 = arith.constant 0 : i32
    %c0_i32_1 = arith.constant 0 : i32
    return %c0_i32, %c0_i32_0 : i32, i32
  }
  func.func @transform_10(%arg0: i32) -> (i32, i32) {
    %c0_i32 = arith.constant 0 : i32
    %c0_i32_0 = arith.constant 0 : i32
    %c0_i32_1 = arith.constant 0 : i32
    return %c0_i32, %c0_i32_0 : i32, i32
  }
  func.func @transform_11(%arg0: i32) -> (i32, i32) {
    %c0_i32 = arith.constant 0 : i32
    %c0_i32_0 = arith.constant 0 : i32
    return %arg0, %c0_i32 : i32, i32
  }
}

</mosaic_0001>

<bundles_post_ra>
// kernel: resblock_forward.1
= control target key start
LH: loop header
LB: loop body
LE: loop exit
PB: predicated region body
PF: predicated region fallthrough
CT: control target
= control target key end

     0   :  { %v171_v0 = vlaneseq  ;;  %s901_s0 = inlined_call_operand.vmem [shape: f32[8,128], index: 0, kind: input, shape index: {}]   ;;  %s902_s1 = inlined_call_operand.vmem [shape: f32[128,128], index: 1, kind: input, shape index: {}]   ;;  %s903_s2 = inlined_call_operand.vmem [shape: f32[1,128], index: 2, kind: input, shape index: {}]   ;;  %s904_s3 = inlined_call_operand.vmem [shape: f32[1,128], index: 3, kind: input, shape index: {}]   ;;  %s905_s4 = inlined_call_operand.vmem [shape: f32[1,128], index: 4, kind: input, shape index: {}]   ;;  %s906_s5 = inlined_call_operand.vmem [shape: f32[128,128], index: 5, kind: input, shape index: {}]   ;;  %s907_s6 = inlined_call_operand.vmem [shape: f32[1,128], index: 6, kind: input, shape index: {}]   ;;  %s908_s7 = inlined_call_operand.vmem [shape: f32[1,128], index: 7, kind: input, shape index: {}]   ;;  %s909_s8 = inlined_call_operand.vmem [shape: f32[1,128], index: 8, kind: input, shape index: {}]   ;;  %s910_s9 = inlined_call_operand.vmem [shape: f32[128,128], index: 9, kind: input, shape index: {}]   ;;  %s911_s10 = inlined_call_operand.vmem [shape: f32[1,128], index: 10, kind: input, shape index: {}]   ;;  %s912_s11 = inlined_call_operand.hbm [shape: f32[8,128], index: 11, kind: output, shape index: {}]  }
   0x1   :  { %16 = vsyncpa [#allocation3], 0  ;;  %v659_v1 = vld [vmem:[%s901_s0] sm:$0xff]  ;;  %v150_v4 = vld [vmem:[%s906_s5 + $0x78] sm:$0xff]  ;;  %v593_v5 = vmov 0.0   ;;  %vm594_vm1 = vmmov 0  }
   0x2   :  { %v661_v2 = vand.u32 127, %v171_v0  ;;  %494 = vmatprep.subr.mxu1 %v593_v5  ;;  %v149_v6 = vld [vmem:[%s906_s5 + $0x70] sm:$0xff]  ;;  %459 = vmatprep.subr.mxu0 %v593_v5  ;;  %v148_v7 = vld [vmem:[%s906_s5 + $0x68] sm:$0xff]  ;;  %v147_v8 = vld [vmem:[%s906_s5 + $0x60] sm:$0xff] }
   0x3   :  { %495 = vmatpush3.msra.mxu1 %v150_v4  ;;  %v146_v14 = vld [vmem:[%s906_s5 + $0x58] sm:$0xff]  ;;  %v145_v15 = vld [vmem:[%s906_s5 + $0x50] sm:$0xff]  ;;  %v144_v16 = vld [vmem:[%s906_s5 + $0x48] sm:$0xff]  ;;  %526 = vmatprep.mubr.msk.f32.mxu1 %vm594_vm1, %v593_v5 }
   0x4   :  { %vm173_vm0 = vcmp.lt.s32.totalorder %v661_v2, 32  ;;  %496 = vmatprep.subr.mxu1 %v593_v5  ;;  %v143_v17 = vld [vmem:[%s906_s5 + $0x40] sm:$0xff]  ;;  %v142_v18 = vld [vmem:[%s906_s5 + $0x38] sm:$0xff]  ;;  %491 = vmatprep.mubr.msk.f32.mxu0 %vm594_vm1, %v593_v5  ;;  %v141_v19 = vld [vmem:[%s906_s5 + $0x30] sm:$0xff]  ;;  %vm279_vm2 = vcmp.lt.s32.totalorder %v661_v2, 64 }
   0x5   :  { %v174_v3 = vsel %vm173_vm0, %v659_v1, 0.0  ;;  %497 = vmatpush3.msra.mxu1 %v149_v6  ;;  %v140_v20 = vld [vmem:[%s906_s5 + $0x28] sm:$0xff]  ;;  %v139_v21 = vld [vmem:[%s906_s5 + $0x20] sm:$0xff]  ;;  %v138_v22 = vld [vmem:[%s906_s5 + $0x18] sm:$0xff] }
   0x6   :  { %175 = vadd.xlane.f32.xlu0 %v174_v3  ;;  %498 = vmatprep.subr.mxu1 %v593_v5  ;;  %v137_v23 = vld [vmem:[%s906_s5 + $0x10] sm:$0xff]  ;;  %v136_v24 = vld [vmem:[%s906_s5 + $0x8] sm:$0xff]  ;;  %v135_v25 = vld [vmem:[%s906_s5] sm:$0xff] }
   0x7   :  { %499 = vmatpush3.msra.mxu1 %v148_v7  ;;  %v402_v30 = vld [vmem:[%s904_s3] ss:$0 sm:$0xff]  ;;  %v55_v41 = vld [vmem:[%s902_s1 + $0x78] sm:$0xff]  ;;  %v54_v42 = vld [vmem:[%s902_s1 + $0x70] sm:$0xff] }
   0x8   :  { %500 = vmatprep.subr.mxu1 %v593_v5  ;;  %v403_v32 = vld [vmem:[%s905_s4] ss:$0 sm:$0xff]  ;;  %460 = vmatpush3.msra.mxu0 %v55_v41  ;;  %v53_v43 = vld [vmem:[%s902_s1 + $0x68] sm:$0xff]  ;;  %v51_v45 = vld [vmem:[%s902_s1 + $0x58] sm:$0xff] }
   0x9   :  { %501 = vmatpush3.msra.mxu1 %v147_v8  ;;  %v404_v35 = vld [vmem:[%s907_s6] ss:$0 sm:$0xff]  ;;  %461 = vmatprep.subr.mxu0 %v593_v5  ;;  %v50_v46 = vld [vmem:[%s902_s1 + $0x50] sm:$0xff]  ;;  %v49_v47 = vld [vmem:[%s902_s1 + $0x48] sm:$0xff] }
   0xa   :  { %502 = vmatprep.subr.mxu1 %v593_v5  ;;  %462 = vmatpush3.msra.mxu0 %v54_v42  ;;  %v52_v44 = vld [vmem:[%s902_s1 + $0x60] sm:$0xff]  ;;  %v47_v49 = vld [vmem:[%s902_s1 + $0x38] sm:$0xff]  ;;  %v46_v50 = vld [vmem:[%s902_s1 + $0x30] sm:$0xff] }
   0xb   :  { %503 = vmatpush3.msra.mxu1 %v146_v14  ;;  %463 = vmatprep.subr.mxu0 %v593_v5  ;;  %v48_v48 = vld [vmem:[%s902_s1 + $0x40] sm:$0xff]  ;;  %v45_v51 = vld [vmem:[%s902_s1 + $0x28] sm:$0xff]  ;;  %v43_v53 = vld [vmem:[%s902_s1 + $0x18] sm:$0xff] }
   0xc   :  { %504 = vmatprep.subr.mxu1 %v593_v5  ;;  %464 = vmatpush3.msra.mxu0 %v53_v43  ;;  %v44_v52 = vld [vmem:[%s902_s1 + $0x20] sm:$0xff]  ;;  %v42_v54 = vld [vmem:[%s902_s1 + $0x10] sm:$0xff]  ;;  %v41_v55 = vld [vmem:[%s902_s1 + $0x8] sm:$0xff] }
   0xd   :  { %505 = vmatpush3.msra.mxu1 %v145_v15  ;;  %465 = vmatprep.subr.mxu0 %v593_v5  ;;  %v40_v56 = vld [vmem:[%s902_s1] sm:$0xff]  ;;  %v169_v57 = vld [vmem:[%s910_s9 + $0x78] sm:$0xff]  ;;  %v168_v58 = vld [vmem:[%s910_s9 + $0x70] sm:$0xff] }
   0xe   :  { %506 = vmatprep.subr.mxu1 %v593_v5  ;;  %466 = vmatpush3.msra.mxu0 %v52_v44  ;;  %v167_v59 = vld [vmem:[%s910_s9 + $0x68] sm:$0xff]  ;;  %v164_v2 = vld [vmem:[%s910_s9 + $0x50] sm:$0xff]  ;;  %v162_v6 = vld [vmem:[%s910_s9 + $0x40] sm:$0xff] }
   0xf   :  { %507 = vmatpush3.msra.mxu1 %v144_v16  ;;  %467 = vmatprep.subr.mxu0 %v593_v5  ;;  %v163_v4 = vld [vmem:[%s910_s9 + $0x48] sm:$0xff]  ;;  %v161_v7 = vld [vmem:[%s910_s9 + $0x38] sm:$0xff]  ;;  %v160_v8 = vld [vmem:[%s910_s9 + $0x30] sm:$0xff] }
  0x10   :  { %508 = vmatprep.subr.mxu1 %v593_v5  ;;  %468 = vmatpush3.msra.mxu0 %v51_v45  ;;  %v154_v14 = vld [vmem:[%s910_s9] sm:$0xff] }
  0x11   :  { %509 = vmatpush3.msra.mxu1 %v143_v17  ;;  %469 = vmatprep.subr.mxu0 %v593_v5 }
  0x12   :  { %510 = vmatprep.subr.mxu1 %v593_v5  ;;  %470 = vmatpush3.msra.mxu0 %v50_v46 }
  0x13   :  { %511 = vmatpush3.msra.mxu1 %v142_v18  ;;  %471 = vmatprep.subr.mxu0 %v593_v5 }
  0x14   :  { %512 = vmatprep.subr.mxu1 %v593_v5  ;;  %472 = vmatpush3.msra.mxu0 %v49_v47 }
  0x15   :  { %513 = vmatpush3.msra.mxu1 %v141_v19  ;;  %473 = vmatprep.subr.mxu0 %v593_v5 }
  0x16   :  { %514 = vmatprep.subr.mxu1 %v593_v5  ;;  %474 = vmatpush3.msra.mxu0 %v48_v48 }
  0x17   :  { %515 = vmatpush3.msra.mxu1 %v140_v20  ;;  %475 = vmatprep.subr.mxu0 %v593_v5 }
  0x18   :  { %516 = vmatprep.subr.mxu1 %v593_v5  ;;  %476 = vmatpush3.msra.mxu0 %v47_v49 }
  0x19   :  { %517 = vmatpush3.msra.mxu1 %v139_v21  ;;  %477 = vmatprep.subr.mxu0 %v593_v5  ;;  %v405_v21 = vld [vmem:[%s908_s7] ss:$0 sm:$0xff]  ;;  %s595_s7 = smov [#allocation2]  }
  0x1a   :  { %518 = vmatprep.subr.mxu1 %v593_v5  ;;  %478 = vmatpush3.msra.mxu0 %v46_v50  ;;  %s393_s14 = sshll.u32 %s595_s7, 4  ;;  %s394_s14 = int_to_ptr.vmem [resolvable:$true] %s393_s14 }
  0x1b   :  { %519 = vmatpush3.msra.mxu1 %v138_v22  ;;  %479 = vmatprep.subr.mxu0 %v593_v5  ;;  %p576_p1 = scmp.lt.s32.totalorder %s394_s14, %s394_s14 }
  0x1c   :  { %520 = vmatprep.subr.mxu1 %v593_v5  ;;  %480 = vmatpush3.msra.mxu0 %v45_v51 }
  0x1d   :  { %521 = vmatpush3.msra.mxu1 %v137_v23  ;;  %481 = vmatprep.subr.mxu0 %v593_v5  ;;  %v406_v23 = vld [vmem:[%s909_s8] ss:$0 sm:$0xff]  ;;  %s571_s8 = scalar_lea.vmem %s394_s14, 128 }
  0x1e   :  { %522 = vmatprep.subr.mxu1 %v593_v5  ;;  %482 = vmatpush3.msra.mxu0 %v44_v52  ;;  %p572_p0 = scmp.ne.s32.totalorder %s394_s14, %s571_s8  ;;  %p577_p2 = scmp.lt.s32.totalorder %s571_s8, %s571_s8 }
  0x1f   :  { %523 = vmatpush3.msra.mxu1 %v136_v24  ;;  %483 = vmatprep.subr.mxu0 %v593_v5 }
  0x20   :  { %524 = vmatprep.subr.mxu1 %v593_v5  ;;  %484 = vmatpush3.msra.mxu0 %v43_v53  ;;  %p578_p3 = por %p577_p2, %p576_p1 }
  0x21   :  { %525 = vmatpush3.msra.mxu1 %v135_v25  ;;  %485 = vmatprep.subr.mxu0 %v593_v5 }
  0x22   :  { %486 = vmatpush3.msra.mxu0 %v42_v54  ;;  %p579_p4 = pnand %p578_p3, %p572_p0 }
  0x23   :  { %487 = vmatprep.subr.mxu0 %v593_v5 }
  0x24   :  { %488 = vmatpush3.msra.mxu0 %v41_v55 }
  0x25   :  { %489 = vmatprep.subr.mxu0 %v593_v5 }
  0x26   :  { %490 = vmatpush3.msra.mxu0 %v40_v56 }
  0x27   :  { %492 = vmatmul.mubr.f32.vlgmr.msra.gmra.mxu0 %v659_v1  ;;  %529 = vmatprep.subr.mxu0 %v593_v5  ;;  %v166_v1 = vld [vmem:[%s910_s9 + $0x60] sm:$0xff] }
  0x28   :  { %530 = vmatpush3.msra.mxu0 %v169_v57  ;;  %561 = vmatprep.mubr.msk.f32.mxu0 %vm594_vm1, %v593_v5 }
  0x29   :  { %531 = vmatprep.subr.mxu0 %v593_v5 }
  0x2a   :  { %532 = vmatpush3.msra.mxu0 %v168_v58 }
  0x2b   :  { %533 = vmatprep.subr.mxu0 %v593_v5 }
  0x2c   :  { %534 = vmatpush3.msra.mxu0 %v167_v59 }
  0x2d   :  { %535 = vmatprep.subr.mxu0 %v593_v5 }
  0x2e   :  { %536 = vmatpush3.msra.mxu0 %v166_v1 }
  0x2f   :  { %537 = vmatprep.subr.mxu0 %v593_v5 }
  0x8f   :  { %v176_v9 = vpop.xlane.xlu0 %175 }
  0x90   :  { %v178_v10 = vmul.f32 0.03125, %v176_v9  ;;  %v159_v9 = vld [vmem:[%s910_s9 + $0x28] sm:$0xff] }
  0x92   :  { %v179_v11 = vsub.f32 %v174_v3, %v178_v10  ;;  %v165_v3 = vld [vmem:[%s910_s9 + $0x58] sm:$0xff]  ;;  %v158_v10 = vld [vmem:[%s910_s9 + $0x20] sm:$0xff] }
  0x93   :  { %538 = vmatpush3.msra.mxu0 %v165_v3 }
  0x94   :  { %v180_v12 = vsel %vm173_vm0, %v179_v11, 0.0  ;;  %539 = vmatprep.subr.mxu0 %v593_v5  ;;  %v157_v11 = vld [vmem:[%s910_s9 + $0x18] sm:$0xff] }
  0x95   :  { %v181_v13 = vmul.f32 %v180_v12, %v180_v12  ;;  %540 = vmatpush3.msra.mxu0 %v164_v2 }
  0x96   :  { %541 = vmatprep.subr.mxu0 %v593_v5 }
  0x97   :  { %182 = vadd.xlane.f32.xlu0 %v181_v13  ;;  %542 = vmatpush3.msra.mxu0 %v163_v4  ;;  %v155_v13 = vld [vmem:[%s910_s9 + $0x8] sm:$0xff] }
  0x98   :  { %543 = vmatprep.subr.mxu0 %v593_v5 }
  0x99   :  { %544 = vmatpush3.msra.mxu0 %v162_v6 }
  0x9a   :  { %545 = vmatprep.subr.mxu0 %v593_v5 }
  0x9b   :  { %546 = vmatpush3.msra.mxu0 %v161_v7 }
  0x9c   :  { %547 = vmatprep.subr.mxu0 %v593_v5 }
  0x9d   :  { %548 = vmatpush3.msra.mxu0 %v160_v8 }
  0x9e   :  { %549 = vmatprep.subr.mxu0 %v593_v5 }
  0x9f   :  { %550 = vmatpush3.msra.mxu0 %v159_v9 }
  0xa0   :  { %551 = vmatprep.subr.mxu0 %v593_v5 }
  0xa1   :  { %552 = vmatpush3.msra.mxu0 %v158_v10 }
  0xa2   :  { %553 = vmatprep.subr.mxu0 %v593_v5 }
  0xa3   :  { %554 = vmatpush3.msra.mxu0 %v157_v11 }
  0xa4   :  { %555 = vmatprep.subr.mxu0 %v593_v5 }
  0xe7   :  { %v129_v15 = vpop.f32.mrf.mxu0 }
  0xe9   :  { %v493_v16 = vpop.f32.mrf.mxu0 }
 0x120   :  { %v183_v26 = vpop.xlane.xlu0 %182 }
 0x121   :  { %v184_v27 = vmul.f32 0.03125, %v183_v26  ;;  %v407_v26 = vld [vmem:[%s911_s10] ss:$0 sm:$0xff] }
 0x123   :  { %v185_v28 = vadd.f32 1e-05, %v184_v27 }
 0x125   :  { %567 = vrsqrt.f32 %v185_v28 }
 0x132   :  { %v568_v29 = vpop.eup %567 }
 0x133   :  { %v187_v31 = vmul.f32 %v568_v29, %v180_v12  ;;  %v156_v12 = vld [vmem:[%s910_s9 + $0x10] sm:$0xff] }
 0x134   :  { %556 = vmatpush3.msra.mxu0 %v156_v12 }
 0x135   :  { %v194_v33 = vmul.f32 %v402_v30, %v187_v31  ;;  %557 = vmatprep.subr.mxu0 %v593_v5 }
 0x136   :  { %558 = vmatpush3.msra.mxu0 %v155_v13 }
 0x137   :  { %v201_v34 = vadd.f32 %v403_v32, %v194_v33  ;;  %559 = vmatprep.subr.mxu0 %v593_v5  ;;  %v401_v5 = vld [vmem:[%s903_s2] ss:$0 sm:$0xff] }
 0x138   :  { %560 = vmatpush3.msra.mxu0 %v154_v14  ;;  %v130_v28 = vadd.f32 %v401_v5, %v129_v15 }
 0x139   :  { %527 = vmatmul.mubr.f32.vlgmr.msra.gmra.mxu1 %v201_v34 }
 0x1f9   :  { %v274_v36 = vpop.f32.mrf.mxu1 }
 0x1fa   :  { %v275_v37 = vadd.f32 %v404_v35, %v274_v36 }
 0x1fb   :  { %v528_v38 = vpop.f32.mrf.mxu1 }
 0x1fc   :  { %v278_v39 = vmax.f32 %v275_v37, 0.0 }
 0x1fe   :  { %v750_v40 = vsel %vm279_vm2, %v278_v39, 0.0 }
 0x1ff   :  { %281 = vadd.xlane.f32.xlu1 %v750_v40 }
 0x288   :  { %v282_v60 = vpop.xlane.xlu1 %281 }
 0x289   :  { %v284_v61 = vmul.f32 0.015625, %v282_v60 }
 0x28b   :  { %v285_v62 = vsub.f32 %v750_v40, %v284_v61 }
 0x28d   :  { %v286_v63 = vsel %vm279_vm2, %v285_v62, 0.0 }
 0x28e   :  { %v287_v0 = vmul.f32 %v286_v63, %v286_v63 }
 0x290   :  { %288 = vadd.xlane.f32.xlu1 %v287_v0 }
 0x319   :  { %v289_v17 = vpop.xlane.xlu1 %288 }
 0x31a   :  { %v290_v18 = vmul.f32 0.015625, %v289_v17 }
 0x31c   :  { %v291_v19 = vadd.f32 1e-05, %v290_v18 }
 0x31e   :  { %569 = vrsqrt.f32 %v291_v19 }
 0x32b   :  { %v570_v20 = vpop.eup %569 }
 0x32c   :  { %v293_v22 = vmul.f32 %v570_v20, %v286_v63 }
 0x32e   :  { %v300_v24 = vmul.f32 %v405_v21, %v293_v22 }
 0x330   :  { %v307_v25 = vadd.f32 %v406_v23, %v300_v24 }
 0x332   :  { %562 = vmatmul.mubr.f32.vlgmr.msra.gmra.mxu0 %v307_v25 }
 0x3f2   :  { %v380_v27 = vpop.f32.mrf.mxu0 }
 0x3f3   :  { %v381_v29 = vadd.f32 %v407_v26, %v380_v27 }
 0x3f4   :  { %v563_v30 = vpop.f32.mrf.mxu0 }
 0x3f5   :  { %v384_v31 = vadd.f32 %v381_v29, %v130_v28 }
 0x3f7   :  { %v385_v32 = vmax.f32 %v384_v31, 0.0 }
 0x3f9   :  { %386 = vst [vmem:[#allocation2] sm:$0xff] %v385_v32 }
 0x3fa   :  { %582 = shalt.err (!%p579_p4)
}
 0x3fb   :  { %396 = dma.vmem_to_hbm [thread:$0]  %s394_s14, 128, %s912_s11, [#allocation3]  }
 0x3fc   :  { %591 = dma.done.wait [#allocation3], 128  }
 0x3fd   :  { %592 = vsyncadd [#allocation3], 4294967168 }
 0x3fe   :  { %400 = vsyncpa [#allocation3], 1 }

</bundles_post_ra>
